<compile_context>
chip_gen: v6e
topology: v6e:2x2x1
jax: 0.10.0
libtpu: 0.0.40
codegen_flags: <defaults>
</compile_context>

<pallas_src>
import functools

import jax
import jax.numpy as jnp
from jax.experimental import pallas as pl
from jax.experimental.pallas import tpu as pltpu


def _round_up(x: int, m: int) -> int:
    return (x + m - 1) // m * m


def _xw_kernel(x_ref, w_ref, o_ref):
    """Fold the linear weight into the features before propagation: Y = X @ W^T."""
    o_ref[...] = jnp.dot(
        x_ref[...], w_ref[...], preferred_element_type=jnp.float32
    ).astype(o_ref.dtype)


def _prop_kernel(a_ref, h_ref, b_ref, o_ref, acc_ref, *, add_bias: bool):
    """One propagation step: acc += A_tile @ H_tile, finalized (+bias) on last k."""
    kk = pl.program_id(1)

    @pl.when(kk == 0)
    def _():
        acc_ref[...] = jnp.zeros_like(acc_ref)

    acc_ref[...] += jnp.dot(
        a_ref[...], h_ref[...], preferred_element_type=jnp.float32
    )

    @pl.when(kk == pl.num_programs(1) - 1)
    def _():
        out = acc_ref[...]
        if add_bias:
            out = out + b_ref[...]
        o_ref[...] = out.astype(o_ref.dtype)


@functools.partial(jax.jit, static_argnames=("K",))
def sgc2_forward(V, E, X, weight, bias, *, K: int = 2):
    """Pallas implementation of SGC_2.forward(V, E, X).

    V      : [N] int32 vertex ids (only its length / max id matters)
    E      : [2, M] int32 edge index (src row 0, dst row 1)
    X      : [N, input_dim] float32 node features
    weight : [output_dim, input_dim]  (PyTorch nn.Linear layout)
    bias   : [output_dim]
    """
    assert K >= 1
    N, F = X.shape
    out_dim = weight.shape[0]

    # ---- glue: dense normalized adjacency from the edge list (plain JAX) ----
    src, dst = E[0], E[1]
    adj = jnp.zeros((N, N), jnp.float32).at[dst, src].set(1.0)
    adj = adj + jnp.eye(N, dtype=jnp.float32)            # add self loops
    deg = jnp.sum(adj, axis=1)
    d_inv_sqrt = jnp.where(deg > 0, 1.0 / jnp.sqrt(deg), 0.0)
    a_norm = d_inv_sqrt[:, None] * adj * d_inv_sqrt[None, :]

    # ---- padded / tiled sizes ----
    if N <= 256:
        Np = _round_up(N, 8)           # single tile each way (full-dim blocks)
        TM = TK = Np
    else:
        TM = TK = 256                  # (256,256) bf16 A tiles: fits v5e/v6e/v7x VMEM
        Np = _round_up(N, 256)
    FP = max(128, _round_up(out_dim, 128))   # lane-dense padded feature width

    # ---- operands: bf16 into the MXU / over HBM, f32 accumulation in-kernel ----
    a_bf = jnp.zeros((Np, Np), jnp.bfloat16).at[:N, :N].set(a_norm.astype(jnp.bfloat16))
    x_bf = jnp.zeros((Np, F), jnp.bfloat16).at[:N, :].set(X.astype(jnp.bfloat16))
    w_bf = jnp.zeros((F, FP), jnp.bfloat16).at[:, :out_dim].set(
        weight.T.astype(jnp.bfloat16))
    b_f32 = jnp.zeros((1, FP), jnp.float32).at[0, :out_dim].set(
        bias.astype(jnp.float32))

    n_row = Np // TM
    n_red = Np // TK

    # ---- 1) fold the linear: Y = X @ W^T  (padded to FP lanes) ----
    y = pl.pallas_call(
        _xw_kernel,
        out_shape=jax.ShapeDtypeStruct((Np, FP), jnp.bfloat16),
        grid_spec=pltpu.PrefetchScalarGridSpec(
            num_scalar_prefetch=0,
            grid=(n_row,),
            in_specs=[
                pl.BlockSpec((TM, F), lambda i: (i, 0)),   # X row strip
                pl.BlockSpec((F, FP), lambda i: (0, 0)),   # W^T (padded), constant
            ],
            out_specs=pl.BlockSpec((TM, FP), lambda i: (i, 0)),
        ),
        compiler_params=pltpu.CompilerParams(dimension_semantics=("parallel",)),
    )(x_bf, w_bf)

    # ---- 2) K propagation steps: H <- A_norm @ H  (bias fused into last step) ----
    h = y
    for step in range(K):
        last = step == K - 1
        h = pl.pallas_call(
            functools.partial(_prop_kernel, add_bias=last),
            out_shape=jax.ShapeDtypeStruct(
                (Np, FP), jnp.float32 if last else jnp.bfloat16),
            grid_spec=pltpu.PrefetchScalarGridSpec(
                num_scalar_prefetch=0,
                grid=(n_row, n_red),                      # reduction axis last
                in_specs=[
                    pl.BlockSpec((TM, TK), lambda i, k: (i, k)),  # A tile (streamed)
                    pl.BlockSpec((TK, FP), lambda i, k: (k, 0)),  # H k-strip
                    pl.BlockSpec((1, FP),  lambda i, k: (0, 0)),  # bias (constant)
                ],
                out_specs=pl.BlockSpec((TM, FP), lambda i, k: (i, 0)),
                scratch_shapes=[pltpu.VMEM((TM, FP), jnp.float32)],  # f32 accumulator
            ),
            compiler_params=pltpu.CompilerParams(
                dimension_semantics=("parallel", "arbitrary")),
        )(a_bf, h, b_f32)

    # slice the valid region back out of the lane-padded output
    return h[:N, :out_dim].astype(X.dtype)


if __name__ == "__main__":
    key = jax.random.PRNGKey(0)
    k_x, k_e, k_w, k_b = jax.random.split(key, 4)

    # Small, module-consistent shapes.
    N = 32          # number of vertices
    M = 64          # number of edges
    input_dim = 16
    output_dim = 8
    K = 2

    V = jnp.arange(N, dtype=jnp.int32)                                   # vertex ids
    E = jax.random.randint(k_e, (2, M), 0, N, dtype=jnp.int32)           # edge index
    X = jax.random.normal(k_x, (N, input_dim), dtype=jnp.float32)        # features

    # Deterministic parameter init (nn.Linear(input_dim, output_dim) shapes).
    bound = 1.0 / jnp.sqrt(jnp.float32(input_dim))
    weight = jax.random.uniform(k_w, (output_dim, input_dim),
                                minval=-bound, maxval=bound, dtype=jnp.float32)
    bias = jax.random.uniform(k_b, (output_dim,),
                              minval=-bound, maxval=bound, dtype=jnp.float32)

    out = sgc2_forward(V, E, X, weight, bias, K=K)
    jax.block_until_ready(out)
    assert out.shape == (N, output_dim)

    # Pure-JAX f32 reference of the same semantics (kernel uses bf16 inputs with
    # f32 accumulation, so compare at bf16-appropriate tolerance).
    adj = jnp.zeros((N, N), jnp.float32).at[E[1], E[0]].set(1.0) + jnp.eye(N)
    deg = adj.sum(axis=1)
    dis = jnp.where(deg > 0, 1.0 / jnp.sqrt(deg), 0.0)
    a_norm = dis[:, None] * adj * dis[None, :]
    h_ref = X
    for _ in range(K):
        h_ref = a_norm @ h_ref
    ref = h_ref @ weight.T + bias
    assert jnp.allclose(out, ref, atol=2e-2, rtol=2e-2), "mismatch vs JAX reference"

    print("KERNEL_OK")
</pallas_src>

<mosaic_0001>
module attributes {stable_mosaic.version = 11 : i64} {
  func.func @_prop_kernel(%arg0: i32, %arg1: i32, %arg2: memref<32x32xbf16, #tpu.memory_space<vmem>>, %arg3: memref<32x128xbf16, #tpu.memory_space<vmem>>, %arg4: memref<1x128xf32, #tpu.memory_space<vmem>>, %arg5: memref<32x128xbf16, #tpu.memory_space<vmem>>, %arg6: memref<32x128xf32, #tpu.memory_space<vmem>>) attributes {dimension_semantics = [#tpu.dimension_semantics<parallel>, #tpu.dimension_semantics<arbitrary>], iteration_bounds = array<i64: 1, 1>, scalar_prefetch = 0 : i64, scratch_operands = 1 : i64, tpu.core_type = #tpu.core_type<tc>, window_params = [{transform_indices = @transform_0, window_bounds = array<i64: 32, 32>}, {transform_indices = @transform_1, window_bounds = array<i64: 32, 128>}, {pipeline_mode = #tpu.pipeline_mode<synchronous>, transform_indices = @transform_2, window_bounds = array<i64: 1, 128>}, {transform_indices = @transform_3, window_bounds = array<i64: 32, 128>}]} {
    %c0_i32 = arith.constant 0 : i32
    %0 = arith.cmpi eq, %arg1, %c0_i32 : i32
    %1 = arith.extui %0 : i1 to i32
    %c0_i32_0 = arith.constant 0 : i32
    %2 = arith.cmpi ne, %1, %c0_i32_0 : i32
    scf.if %2 {
      %cst_10 = arith.constant 0.000000e+00 : f32
      %12 = vector.broadcast %cst_10 : f32 to vector<32x128xf32>
      %c0_11 = arith.constant 0 : index
      %c0_12 = arith.constant 0 : index
      %13 = vector.load %arg6[%c0_11, %c0_12] : memref<32x128xf32, #tpu.memory_space<vmem>>, vector<32x128xf32>
      tpu.vector_store %arg6[%c0_11, %c0_12], %12 {strides = array<i32>} : memref<32x128xf32, #tpu.memory_space<vmem>>, vector<32x128xf32>,
    } else {
    }
    %c0 = arith.constant 0 : index
    %c0_1 = arith.constant 0 : index
    %3 = vector.load %arg6[%c0, %c0_1] : memref<32x128xf32, #tpu.memory_space<vmem>>, vector<32x128xf32>
    %c0_2 = arith.constant 0 : index
    %c0_3 = arith.constant 0 : index
    %4 = vector.load %arg2[%c0_2, %c0_3] : memref<32x32xbf16, #tpu.memory_space<vmem>>, vector<32x32xbf16>
    %c0_4 = arith.constant 0 : index
    %c0_5 = arith.constant 0 : index
    %5 = vector.load %arg3[%c0_4, %c0_5] : memref<32x128xbf16, #tpu.memory_space<vmem>>, vector<32x128xbf16>
    %cst = arith.constant dense<0.000000e+00> : vector<32x128xf32>
    %6 = tpu.matmul %4, %5, %cst {dimension_numbers = #tpu.dot_dimension_numbers<[1], [0], [0], [1], [0, 0, 1, 1], [], []>} : vector<32x32xbf16>, vector<32x128xbf16>, vector<32x128xf32> -> vector<32x128xf32>
    %7 = arith.addf %3, %6 : vector<32x128xf32>
    %c0_6 = arith.constant 0 : index
    %c0_7 = arith.constant 0 : index
    %8 = vector.load %arg6[%c0_6, %c0_7] : memref<32x128xf32, #tpu.memory_space<vmem>>, vector<32x128xf32>
    tpu.vector_store %arg6[%c0_6, %c0_7], %7 {strides = array<i32>} : memref<32x128xf32, #tpu.memory_space<vmem>>, vector<32x128xf32>,
    %c0_i32_8 = arith.constant 0 : i32
    %9 = arith.cmpi eq, %arg1, %c0_i32_8 : i32
    %10 = arith.extui %9 : i1 to i32
    %c0_i32_9 = arith.constant 0 : i32
    %11 = arith.cmpi ne, %10, %c0_i32_9 : i32
    scf.if %11 {
      %c0_10 = arith.constant 0 : index
      %c0_11 = arith.constant 0 : index
      %12 = vector.load %arg6[%c0_10, %c0_11] : memref<32x128xf32, #tpu.memory_space<vmem>>, vector<32x128xf32>
      %13 = arith.truncf %12 : vector<32x128xf32> to vector<32x128xbf16>
      %c0_12 = arith.constant 0 : index
      %c0_13 = arith.constant 0 : index
      %14 = vector.load %arg5[%c0_12, %c0_13] : memref<32x128xbf16, #tpu.memory_space<vmem>>, vector<32x128xbf16>
      tpu.vector_store %arg5[%c0_12, %c0_13], %13 {strides = array<i32>} : memref<32x128xbf16, #tpu.memory_space<vmem>>, vector<32x128xbf16>,
    } else {
    }
    return
  }
  func.func @transform_0(%arg0: i32, %arg1: i32) -> (i32, i32) {
    %c0_i32 = arith.constant 0 : i32
    return %arg0, %arg1 : i32, i32
  }
  func.func @transform_1(%arg0: i32, %arg1: i32) -> (i32, i32) {
    %c0_i32 = arith.constant 0 : i32
    %c0_i32_0 = arith.constant 0 : i32
    return %arg1, %c0_i32 : i32, i32
  }
  func.func @transform_2(%arg0: i32, %arg1: i32) -> (i32, i32) {
    %c0_i32 = arith.constant 0 : i32
    %c0_i32_0 = arith.constant 0 : i32
    %c0_i32_1 = arith.constant 0 : i32
    return %c0_i32, %c0_i32_0 : i32, i32
  }
  func.func @transform_3(%arg0: i32, %arg1: i32) -> (i32, i32) {
    %c0_i32 = arith.constant 0 : i32
    %c0_i32_0 = arith.constant 0 : i32
    return %arg0, %c0_i32 : i32, i32
  }
}

module attributes {stable_mosaic.version = 11 : i64} {
  func.func @_prop_kernel(%arg0: i32, %arg1: i32, %arg2: memref<32x32xbf16, #tpu.memory_space<vmem>>, %arg3: memref<32x128xbf16, #tpu.memory_space<vmem>>, %arg4: memref<1x128xf32, #tpu.memory_space<vmem>>, %arg5: memref<32x128xf32, #tpu.memory_space<vmem>>, %arg6: memref<32x128xf32, #tpu.memory_space<vmem>>) attributes {dimension_semantics = [#tpu.dimension_semantics<parallel>, #tpu.dimension_semantics<arbitrary>], iteration_bounds = array<i64: 1, 1>, scalar_prefetch = 0 : i64, scratch_operands = 1 : i64, tpu.core_type = #tpu.core_type<tc>, window_params = [{transform_indices = @transform_0, window_bounds = array<i64: 32, 32>}, {transform_indices = @transform_1, window_bounds = array<i64: 32, 128>}, {pipeline_mode = #tpu.pipeline_mode<synchronous>, transform_indices = @transform_2, window_bounds = array<i64: 1, 128>}, {transform_indices = @transform_3, window_bounds = array<i64: 32, 128>}]} {
    %c0_i32 = arith.constant 0 : i32
    %0 = arith.cmpi eq, %arg1, %c0_i32 : i32
    %1 = arith.extui %0 : i1 to i32
    %c0_i32_0 = arith.constant 0 : i32
    %2 = arith.cmpi ne, %1, %c0_i32_0 : i32
    scf.if %2 {
      %cst_10 = arith.constant 0.000000e+00 : f32
      %12 = vector.broadcast %cst_10 : f32 to vector<32x128xf32>
      %c0_11 = arith.constant 0 : index
      %c0_12 = arith.constant 0 : index
      %13 = vector.load %arg6[%c0_11, %c0_12] : memref<32x128xf32, #tpu.memory_space<vmem>>, vector<32x128xf32>
      tpu.vector_store %arg6[%c0_11, %c0_12], %12 {strides = array<i32>} : memref<32x128xf32, #tpu.memory_space<vmem>>, vector<32x128xf32>,
    } else {
    }
    %c0 = arith.constant 0 : index
    %c0_1 = arith.constant 0 : index
    %3 = vector.load %arg6[%c0, %c0_1] : memref<32x128xf32, #tpu.memory_space<vmem>>, vector<32x128xf32>
    %c0_2 = arith.constant 0 : index
    %c0_3 = arith.constant 0 : index
    %4 = vector.load %arg2[%c0_2, %c0_3] : memref<32x32xbf16, #tpu.memory_space<vmem>>, vector<32x32xbf16>
    %c0_4 = arith.constant 0 : index
    %c0_5 = arith.constant 0 : index
    %5 = vector.load %arg3[%c0_4, %c0_5] : memref<32x128xbf16, #tpu.memory_space<vmem>>, vector<32x128xbf16>
    %cst = arith.constant dense<0.000000e+00> : vector<32x128xf32>
    %6 = tpu.matmul %4, %5, %cst {dimension_numbers = #tpu.dot_dimension_numbers<[1], [0], [0], [1], [0, 0, 1, 1], [], []>} : vector<32x32xbf16>, vector<32x128xbf16>, vector<32x128xf32> -> vector<32x128xf32>
    %7 = arith.addf %3, %6 : vector<32x128xf32>
    %c0_6 = arith.constant 0 : index
    %c0_7 = arith.constant 0 : index
    %8 = vector.load %arg6[%c0_6, %c0_7] : memref<32x128xf32, #tpu.memory_space<vmem>>, vector<32x128xf32>
    tpu.vector_store %arg6[%c0_6, %c0_7], %7 {strides = array<i32>} : memref<32x128xf32, #tpu.memory_space<vmem>>, vector<32x128xf32>,
    %c0_i32_8 = arith.constant 0 : i32
    %9 = arith.cmpi eq, %arg1, %c0_i32_8 : i32
    %10 = arith.extui %9 : i1 to i32
    %c0_i32_9 = arith.constant 0 : i32
    %11 = arith.cmpi ne, %10, %c0_i32_9 : i32
    scf.if %11 {
      %c0_10 = arith.constant 0 : index
      %c0_11 = arith.constant 0 : index
      %12 = vector.load %arg6[%c0_10, %c0_11] : memref<32x128xf32, #tpu.memory_space<vmem>>, vector<32x128xf32>
      %c0_12 = arith.constant 0 : index
      %c0_13 = arith.constant 0 : index
      %13 = vector.load %arg4[%c0_12, %c0_13] : memref<1x128xf32, #tpu.memory_space<vmem>>, vector<1x128xf32>
      %14 = vector.broadcast %13 : vector<1x128xf32> to vector<32x128xf32>
      %15 = arith.addf %12, %14 : vector<32x128xf32>
      %c0_14 = arith.constant 0 : index
      %c0_15 = arith.constant 0 : index
      %16 = vector.load %arg5[%c0_14, %c0_15] : memref<32x128xf32, #tpu.memory_space<vmem>>, vector<32x128xf32>
      tpu.vector_store %arg5[%c0_14, %c0_15], %15 {strides = array<i32>} : memref<32x128xf32, #tpu.memory_space<vmem>>, vector<32x128xf32>,
    } else {
    }
    return
  }
  func.func @transform_0(%arg0: i32, %arg1: i32) -> (i32, i32) {
    %c0_i32 = arith.constant 0 : i32
    return %arg0, %arg1 : i32, i32
  }
  func.func @transform_1(%arg0: i32, %arg1: i32) -> (i32, i32) {
    %c0_i32 = arith.constant 0 : i32
    %c0_i32_0 = arith.constant 0 : i32
    return %arg1, %c0_i32 : i32, i32
  }
  func.func @transform_2(%arg0: i32, %arg1: i32) -> (i32, i32) {
    %c0_i32 = arith.constant 0 : i32
    %c0_i32_0 = arith.constant 0 : i32
    %c0_i32_1 = arith.constant 0 : i32
    return %c0_i32, %c0_i32_0 : i32, i32
  }
  func.func @transform_3(%arg0: i32, %arg1: i32) -> (i32, i32) {
    %c0_i32 = arith.constant 0 : i32
    %c0_i32_0 = arith.constant 0 : i32
    return %arg0, %c0_i32 : i32, i32
  }
}

module attributes {stable_mosaic.version = 11 : i64} {
  func.func @_xw_kernel(%arg0: i32, %arg1: memref<32x16xbf16, #tpu.memory_space<vmem>>, %arg2: memref<16x128xbf16, #tpu.memory_space<vmem>>, %arg3: memref<32x128xbf16, #tpu.memory_space<vmem>>) attributes {dimension_semantics = [#tpu.dimension_semantics<parallel>], iteration_bounds = array<i64: 1>, scalar_prefetch = 0 : i64, scratch_operands = 0 : i64, tpu.core_type = #tpu.core_type<tc>, window_params = [{transform_indices = @transform_0, window_bounds = array<i64: 32, 16>}, {pipeline_mode = #tpu.pipeline_mode<synchronous>, transform_indices = @transform_1, window_bounds = array<i64: 16, 128>}, {transform_indices = @transform_2, window_bounds = array<i64: 32, 128>}]} {
    %c0 = arith.constant 0 : index
    %c0_0 = arith.constant 0 : index
    %0 = vector.load %arg1[%c0, %c0_0] : memref<32x16xbf16, #tpu.memory_space<vmem>>, vector<32x16xbf16>
    %c0_1 = arith.constant 0 : index
    %c0_2 = arith.constant 0 : index
    %1 = vector.load %arg2[%c0_1, %c0_2] : memref<16x128xbf16, #tpu.memory_space<vmem>>, vector<16x128xbf16>
    %cst = arith.constant dense<0.000000e+00> : vector<32x128xf32>
    %2 = tpu.matmul %0, %1, %cst {dimension_numbers = #tpu.dot_dimension_numbers<[1], [0], [0], [1], [0, 0, 1, 1], [], []>} : vector<32x16xbf16>, vector<16x128xbf16>, vector<32x128xf32> -> vector<32x128xf32>
    %3 = arith.truncf %2 : vector<32x128xf32> to vector<32x128xbf16>
    %c0_3 = arith.constant 0 : index
    %c0_4 = arith.constant 0 : index
    %4 = vector.load %arg3[%c0_3, %c0_4] : memref<32x128xbf16, #tpu.memory_space<vmem>>, vector<32x128xbf16>
    tpu.vector_store %arg3[%c0_3, %c0_4], %3 {strides = array<i32>} : memref<32x128xbf16, #tpu.memory_space<vmem>>, vector<32x128xbf16>,
    return
  }
  func.func @transform_0(%arg0: i32) -> (i32, i32) {
    %c0_i32 = arith.constant 0 : i32
    %c0_i32_0 = arith.constant 0 : i32
    return %arg0, %c0_i32 : i32, i32
  }
  func.func @transform_1(%arg0: i32) -> (i32, i32) {
    %c0_i32 = arith.constant 0 : i32
    %c0_i32_0 = arith.constant 0 : i32
    %c0_i32_1 = arith.constant 0 : i32
    return %c0_i32, %c0_i32_0 : i32, i32
  }
  func.func @transform_2(%arg0: i32) -> (i32, i32) {
    %c0_i32 = arith.constant 0 : i32
    %c0_i32_0 = arith.constant 0 : i32
    return %arg0, %c0_i32 : i32, i32
  }
}

</mosaic_0001>

<bundles_post_ra>
// kernel: sgc2_forward.5
= control target key start
LH: loop header
LB: loop body
LE: loop exit
PB: predicated region body
PF: predicated region fallthrough
CT: control target
= control target key end

     0   :  { %vm57_vm0 = vcmask 261120   ;;  %s217_s1 = inlined_call_operand.vmem [shape: bf16[32,128], index: 1, kind: input, shape index: {}]   ;;  %s218_s0 = inlined_call_operand.vmem [shape: bf16[32,32], index: 0, kind: input, shape index: {}]   ;;  %s219_s2 = inlined_call_operand.vmem [shape: f32[1,128], index: 2, kind: input, shape index: {}]   ;;  %s220_s3 = inlined_call_operand.vmem [shape: f32[32,128], index: 3, kind: output, shape index: {}]  }
   0x1   :  { %v166_v0 = vld [vmem:[%s217_s1 + $0x8] sm:$0xff]   ;;  %v167_v1 = vld [vmem:[%s217_s1] sm:$0xff]  }
   0x2   :  { %158 = vmatprep.subr.bf16.mxu0 %v166_v0  ;;  %v168_v2 = vld [vmem:[%s218_s0] sm:$0xff]   ;;  %v169_v3 = vld [vmem:[%s218_s0 + $0x8] sm:$0xff]  }
   0x3   :  { %159 = vmatpush3.bf16.msra.mxu0 %v166_v0  ;;  %162 = vmatprep.mubr.msk.bf16.mxu0 %vm57_vm0, %v168_v2  ;;  %v153_v4 = vld [vmem:[%s219_s2] ss:$0 sm:$0xff] }
   0x4   :  { %160 = vmatprep.subr.bf16.mxu0 %v167_v1 }
   0x7   :  { %161 = vmatpush3.bf16.msra.mxu0 %v167_v1 }
   0xa   :  { %163 = vmatmul.mubr.msk.bf16.vlgmr.msra.gmra.mxu0 %vm57_vm0, %v169_v3 }
  0xca   :  { %v164_v5 = vpop.f32.mrf.mxu0 }
  0xcb   :  { %v137_v6 = vadd.f32 %v164_v5, %v153_v4 }
  0xcc   :  { %v98_v7 = vpop.f32.mrf.mxu0 }
  0xcd   :  { %141 = vst [vmem:[%s220_s3 + $0x10] sm:$0xff] %v137_v6  ;;  %v135_v8 = vadd.f32 %v153_v4, %v98_v7 }
  0xce   :  { %v165_v9 = vpop.f32.mrf.mxu0 }
  0xcf   :  { %139 = vst [vmem:[%s220_s3] sm:$0xff] %v135_v8  ;;  %v138_v10 = vadd.f32 %v165_v9, %v153_v4 }
  0xd0   :  { %v101_v11 = vpop.f32.mrf.mxu0 }
  0xd1   :  { %142 = vst [vmem:[%s220_s3 + $0x18] sm:$0xff] %v138_v10  ;;  %v136_v12 = vadd.f32 %v153_v4, %v101_v11 }
  0xd3   :  { %140 = vst [vmem:[%s220_s3 + $0x8] sm:$0xff] %v136_v12 }

// kernel: sgc2_forward.3
= control target key start
LH: loop header
LB: loop body
LE: loop exit
PB: predicated region body
PF: predicated region fallthrough
CT: control target
= control target key end

     0   :  { %vm34_vm0 = vcmask 130048   ;;  %s180_s1 = inlined_call_operand.vmem [shape: bf16[16,128], index: 1, kind: input, shape index: {}]   ;;  %s181_s0 = inlined_call_operand.vmem [shape: bf16[32,16], index: 0, kind: input, shape index: {}]   ;;  %s182_s2 = inlined_call_operand.vmem [shape: bf16[32,128], index: 2, kind: output, shape index: {}]  }
   0x1   :  { %v147_v0 = vld [vmem:[%s180_s1] sm:$0xff]   ;;  %v149_v2 = vld [vmem:[%s181_s0 + $0x8] sm:$0xff]  }
   0x2   :  { %v148_v1 = vld [vmem:[%s181_s0] sm:$0xff]   ;;  %141 = vmatprep.subr.bf16.mxu0 %v147_v0 }
   0x3   :  { %142 = vmatpush3.bf16.msra.mxu0 %v147_v0  ;;  %143 = vmatprep.mubr.msk.bf16.mxu0 %vm34_vm0, %v148_v1 }
   0x6   :  { %144 = vmatmul.mubr.msk.bf16.vlgmr.msra.gmra.mxu0 %vm34_vm0, %v149_v2 }
  0xc6   :  { %v145_v3 = vpop.f32.mrf.mxu0 }
  0xc8   :  { %v75_v4 = vpop.f32.mrf.mxu0 }
  0xca   :  { %v146_v5 = vpop.f32.mrf.mxu0 }
  0xcb   :  { %v135_v6 = vpack.c.bf16 %v146_v5, %v145_v3 }
  0xcc   :  { %v78_v7 = vpop.f32.mrf.mxu0 }
  0xcd   :  { %137 = vst [vmem:[%s182_s2 + $0x8] sm:$0xff] %v135_v6   ;;  %v130_v8 = vpack.c.bf16 %v78_v7, %v75_v4 }
  0xcf   :  { %131 = vst [vmem:[%s182_s2] sm:$0xff] %v130_v8  }

// kernel: sgc2_forward.4
= control target key start
LH: loop header
LB: loop body
LE: loop exit
PB: predicated region body
PF: predicated region fallthrough
CT: control target
= control target key end

     0   :  { %vm57_vm0 = vcmask 261120   ;;  %s231_s1 = inlined_call_operand.vmem [shape: bf16[32,128], index: 1, kind: input, shape index: {}]   ;;  %s232_s2 = inlined_call_operand.vmem [shape: f32[1,128], index: 2, kind: input, shape index: {}]   ;;  %s233_s0 = inlined_call_operand.vmem [shape: bf16[32,32], index: 0, kind: input, shape index: {}]   ;;  %s234_s3 = inlined_call_operand.vmem [shape: bf16[32,128], index: 3, kind: output, shape index: {}]  }
   0x1   :  { %v189_v0 = vld [vmem:[%s231_s1 + $0x8] sm:$0xff]   ;;  %v190_v1 = vld [vmem:[%s231_s1] sm:$0xff]  }
   0x2   :  { %181 = vmatprep.subr.bf16.mxu0 %v189_v0  ;;  %v191_v2 = vld [vmem:[%s233_s0] sm:$0xff]   ;;  %v192_v3 = vld [vmem:[%s233_s0 + $0x8] sm:$0xff]  }
   0x3   :  { %182 = vmatpush3.bf16.msra.mxu0 %v189_v0  ;;  %185 = vmatprep.mubr.msk.bf16.mxu0 %vm57_vm0, %v191_v2 }
   0x4   :  { %183 = vmatprep.subr.bf16.mxu0 %v190_v1 }
   0x7   :  { %184 = vmatpush3.bf16.msra.mxu0 %v190_v1 }
   0xa   :  { %186 = vmatmul.mubr.msk.bf16.vlgmr.msra.gmra.mxu0 %vm57_vm0, %v192_v3 }
  0xca   :  { %v187_v4 = vpop.f32.mrf.mxu0 }
  0xcc   :  { %v98_v5 = vpop.f32.mrf.mxu0 }
  0xce   :  { %v188_v6 = vpop.f32.mrf.mxu0 }
  0xcf   :  { %v174_v7 = vpack.c.bf16 %v188_v6, %v187_v4 }
  0xd0   :  { %v101_v8 = vpop.f32.mrf.mxu0 }
  0xd1   :  { %176 = vst [vmem:[%s234_s3 + $0x8] sm:$0xff] %v174_v7   ;;  %v169_v9 = vpack.c.bf16 %v101_v8, %v98_v5 }
  0xd3   :  { %170 = vst [vmem:[%s234_s3] sm:$0xff] %v169_v9  }

</bundles_post_ra>
